<compile_context>
chip_gen: v7x
topology: tpu7x:2x2x1
jax: 0.10.0
libtpu: 0.0.40
codegen_flags: <defaults>
</compile_context>

<pallas_src>
import functools

import jax
import jax.numpy as jnp
from jax.experimental import pallas as pl
from jax.experimental.pallas import tpu as pltpu

EPS = 1e-6


def _residual_kernel(x_ref, w_ref, b_ref, o_ref):
    # x_ref: (TM, D) f32 tile (streamed); w_ref: (D, D) bf16 (resident);
    # b_ref: (1, D) f32 (resident); o_ref: (TM, D).
    x = x_ref[...].astype(jnp.float32)
    d = x.shape[-1]

    # --- LayerNormalization (torch.std: unbiased ddof=1; eps added to std) ---
    mean = jnp.mean(x, axis=-1, keepdims=True)
    diff = x - mean
    var_unbiased = jnp.sum(diff * diff, axis=-1, keepdims=True) * (1.0 / (d - 1))
    std = jnp.sqrt(var_unbiased)
    # Per-row reciprocal (TM values) instead of a (TM, D) per-element divide;
    # exact variant keeps bit-level agreement with the reference semantics.
    inv = pl.reciprocal(std + jnp.float32(EPS), approx=False)
    # alpha is folded into w and beta into b (see wrapper), so the normalized
    # activation here is just (x - mean) / (std + eps).
    normed = (diff * inv).astype(jnp.bfloat16)

    # --- sublayer: Linear(D, D) on the MXU, bf16 operands, f32 accumulate ---
    y = jnp.dot(normed, w_ref[...], preferred_element_type=jnp.float32)
    y = y + b_ref[...]

    # --- dropout (identity in eval) + residual add, all in f32 ---
    o_ref[...] = (x + y).astype(o_ref.dtype)


@functools.partial(jax.jit, static_argnames=("tm",))
def residual_connection(x, w, b, alpha, beta, *, tm=512):
    """x: [B, S, D] float32; w: [D, D]; b: [D]; alpha, beta: scalars."""
    B, S, D = x.shape
    N = B * S

    # Row tile: multiple of 8 (f32 sublane), no larger than the padded row
    # count. TM ~512 reaches ~85% of HBM roofline for the streamed operands
    # while keeping the double-buffered footprint small enough for v7x.
    tm = min(tm, max(8, ((N + 7) // 8) * 8))
    n_blocks = pl.cdiv(N, tm)
    n_pad = n_blocks * tm

    x2d = x.reshape(N, D).astype(jnp.float32)
    if n_pad != N:
        # Zero pad rows are safe: diff == 0 -> normed == 0 (no NaN/Inf); the
        # padded outputs are sliced off below.
        x2d = jnp.pad(x2d, ((0, n_pad - N), (0, 0)))

    # Fold the scalar LayerNorm params into the Linear params (one-time, tiny):
    #   (alpha*u + beta) @ w + b == u @ (alpha*w) + (beta*colsum(w) + b)
    alpha = jnp.asarray(alpha, jnp.float32)
    beta = jnp.asarray(beta, jnp.float32)
    w32 = w.astype(jnp.float32)
    w_scaled = (alpha * w32).astype(jnp.bfloat16)      # resident bf16 weight
    b_fused = (b.astype(jnp.float32) + beta * jnp.sum(w32, axis=0)).reshape(1, D)

    # VMEM budget: double-buffered x + out tiles (f32), resident bf16 weight,
    # fused f32 bias, plus headroom for compiler scratch.
    vmem_limit = int(min(
        100 * 1024 * 1024,
        4 * tm * D * 4            # x + out tiles, 2x double-buffered, f32
        + D * D * 2 + D * 4       # resident bf16 weight + f32 fused bias
        + (8 << 20),              # headroom
    ))

    out2d = pl.pallas_call(
        _residual_kernel,
        out_shape=jax.ShapeDtypeStruct((n_pad, D), x.dtype),
        grid=(n_blocks,),
        in_specs=[
            pl.BlockSpec((tm, D), lambda i: (i, 0)),   # x: streamed row tiles
            pl.BlockSpec((D, D), lambda i: (0, 0)),    # w: resident across grid
            pl.BlockSpec((1, D), lambda i: (0, 0)),    # b: resident across grid
        ],
        out_specs=pl.BlockSpec((tm, D), lambda i: (i, 0)),
        compiler_params=pltpu.CompilerParams(
            dimension_semantics=("parallel",),         # megacore sharding (v7x)
            vmem_limit_bytes=vmem_limit,
        ),
    )(x2d, w_scaled, b_fused)

    return out2d[:N].reshape(B, S, D)


def _reference_f32(x, w, b, alpha, beta):
    # Pure f32 reference for the module semantics.
    mean = jnp.mean(x, axis=-1, keepdims=True)
    std = jnp.std(x, axis=-1, keepdims=True, ddof=1)
    normed = alpha * (x - mean) / (std + EPS) + beta
    return x + (normed @ w + b)


def _reference_kernel_precision(x, w, b, alpha, beta):
    # Emulates the kernel's numerics: folded params + bf16 matmul operands.
    mean = jnp.mean(x, axis=-1, keepdims=True)
    std = jnp.std(x, axis=-1, keepdims=True, ddof=1)
    u = ((x - mean) / (std + EPS)).astype(jnp.bfloat16)
    w_scaled = (alpha * w).astype(jnp.bfloat16)
    b_fused = b + beta * jnp.sum(w, axis=0)
    y = jnp.dot(u, w_scaled, preferred_element_type=jnp.float32) + b_fused
    return x + y


if __name__ == "__main__":
    key = jax.random.PRNGKey(0)
    kx, kw, kb = jax.random.split(key, 3)

    B, S, D = 2, 8, 128
    x = jax.random.normal(kx, (B, S, D), dtype=jnp.float32)

    # Deterministic sublayer (Linear) parameters.
    w = jax.random.normal(kw, (D, D), dtype=jnp.float32) * (1.0 / jnp.sqrt(D))
    b = jax.random.normal(kb, (D,), dtype=jnp.float32) * 0.01

    # LayerNormalization parameters as initialized in __init__.
    alpha = 1.0
    beta = 0.0

    out = jax.block_until_ready(residual_connection(x, w, b, alpha, beta))
    assert out.shape == (B, S, D)

    ref_tight = _reference_kernel_precision(x, w, b, alpha, beta)
    ref_f32 = _reference_f32(x, w, b, alpha, beta)
    assert jnp.allclose(out, ref_tight, atol=2e-3, rtol=2e-3), \
        "mismatch vs bf16-matmul reference"
    assert jnp.allclose(out, ref_f32, atol=5e-2, rtol=5e-2), \
        "mismatch vs f32 module semantics"

    print("KERNEL_OK")
</pallas_src>

<mosaic_0001>
module attributes {stable_mosaic.version = 11 : i64} {
  func.func @_residual_kernel(%arg0: i32, %arg1: memref<16x128xf32, #tpu.memory_space<vmem>>, %arg2: memref<128x128xbf16, #tpu.memory_space<vmem>>, %arg3: memref<1x128xf32, #tpu.memory_space<vmem>>, %arg4: memref<16x128xf32, #tpu.memory_space<vmem>>) attributes {dimension_semantics = [#tpu.dimension_semantics<parallel>], iteration_bounds = array<i64: 1>, scalar_prefetch = 0 : i64, scratch_operands = 0 : i64, tpu.core_type = #tpu.core_type<tc>, window_params = [{transform_indices = @transform_0, window_bounds = array<i64: 16, 128>}, {pipeline_mode = #tpu.pipeline_mode<synchronous>, transform_indices = @transform_1, window_bounds = array<i64: 128, 128>}, {pipeline_mode = #tpu.pipeline_mode<synchronous>, transform_indices = @transform_2, window_bounds = array<i64: 1, 128>}, {transform_indices = @transform_3, window_bounds = array<i64: 16, 128>}]} {
    %c0 = arith.constant 0 : index
    %c0_0 = arith.constant 0 : index
    %0 = vector.load %arg1[%c0, %c0_0] : memref<16x128xf32, #tpu.memory_space<vmem>>, vector<16x128xf32>
    %cst = arith.constant dense<0.000000e+00> : vector<16xf32>
    %1 = vector.multi_reduction <add>, %0, %cst [1] : vector<16x128xf32> to vector<16xf32>
    %2 = vector.shape_cast %1 : vector<16xf32> to vector<16x1xf32>
    %cst_1 = arith.constant 1.280000e+02 : f32
    %3 = vector.broadcast %cst_1 : f32 to vector<16x1xf32>
    %4 = arith.divf %2, %3 : vector<16x1xf32>
    %5 = vector.broadcast %4 : vector<16x1xf32> to vector<16x128xf32>
    %6 = arith.subf %0, %5 : vector<16x128xf32>
    %7 = arith.mulf %6, %6 : vector<16x128xf32>
    %cst_2 = arith.constant dense<0.000000e+00> : vector<16xf32>
    %8 = vector.multi_reduction <add>, %7, %cst_2 [1] : vector<16x128xf32> to vector<16xf32>
    %9 = vector.shape_cast %8 : vector<16xf32> to vector<16x1xf32>
    %cst_3 = arith.constant 0.00787401571 : f32
    %10 = vector.broadcast %cst_3 : f32 to vector<16x1xf32>
    %11 = arith.mulf %9, %10 : vector<16x1xf32>
    %12 = math.sqrt %11 : vector<16x1xf32>
    %cst_4 = arith.constant 9.99999997E-7 : f32
    %13 = vector.broadcast %cst_4 : f32 to vector<16x1xf32>
    %14 = arith.addf %12, %13 : vector<16x1xf32>
    %15 = tpu.reciprocal %14 : vector<16x1xf32> -> vector<16x1xf32>
    %16 = vector.broadcast %15 : vector<16x1xf32> to vector<16x128xf32>
    %17 = arith.mulf %6, %16 : vector<16x128xf32>
    %18 = arith.truncf %17 : vector<16x128xf32> to vector<16x128xbf16>
    %c0_5 = arith.constant 0 : index
    %c0_6 = arith.constant 0 : index
    %19 = vector.load %arg2[%c0_5, %c0_6] : memref<128x128xbf16, #tpu.memory_space<vmem>>, vector<128x128xbf16>
    %cst_7 = arith.constant dense<0.000000e+00> : vector<16x128xf32>
    %20 = tpu.matmul %18, %19, %cst_7 {dimension_numbers = #tpu.dot_dimension_numbers<[1], [0], [0], [1], [0, 0, 1, 1], [], []>} : vector<16x128xbf16>, vector<128x128xbf16>, vector<16x128xf32> -> vector<16x128xf32>
    %c0_8 = arith.constant 0 : index
    %c0_9 = arith.constant 0 : index
    %21 = vector.load %arg3[%c0_8, %c0_9] : memref<1x128xf32, #tpu.memory_space<vmem>>, vector<1x128xf32>
    %22 = vector.broadcast %21 : vector<1x128xf32> to vector<16x128xf32>
    %23 = arith.addf %20, %22 : vector<16x128xf32>
    %24 = arith.addf %0, %23 : vector<16x128xf32>
    %c0_10 = arith.constant 0 : index
    %c0_11 = arith.constant 0 : index
    %25 = vector.load %arg4[%c0_10, %c0_11] : memref<16x128xf32, #tpu.memory_space<vmem>>, vector<16x128xf32>
    tpu.vector_store %arg4[%c0_10, %c0_11], %24 {strides = array<i32>} : memref<16x128xf32, #tpu.memory_space<vmem>>, vector<16x128xf32>,
    return
  }
  func.func @transform_0(%arg0: i32) -> (i32, i32) {
    %c0_i32 = arith.constant 0 : i32
    %c0_i32_0 = arith.constant 0 : i32
    return %arg0, %c0_i32 : i32, i32
  }
  func.func @transform_1(%arg0: i32) -> (i32, i32) {
    %c0_i32 = arith.constant 0 : i32
    %c0_i32_0 = arith.constant 0 : i32
    %c0_i32_1 = arith.constant 0 : i32
    return %c0_i32, %c0_i32_0 : i32, i32
  }
  func.func @transform_2(%arg0: i32) -> (i32, i32) {
    %c0_i32 = arith.constant 0 : i32
    %c0_i32_0 = arith.constant 0 : i32
    %c0_i32_1 = arith.constant 0 : i32
    return %c0_i32, %c0_i32_0 : i32, i32
  }
  func.func @transform_3(%arg0: i32) -> (i32, i32) {
    %c0_i32 = arith.constant 0 : i32
    %c0_i32_0 = arith.constant 0 : i32
    return %arg0, %c0_i32 : i32, i32
  }
}

</mosaic_0001>

<bundles_post_ra>
// kernel: residual_connection.1
= control target key start
LH: loop header
LB: loop body
LE: loop exit
PB: predicated region body
PF: predicated region fallthrough
CT: control target
= control target key end

     0   :  { %s351_s0 = inlined_call_operand.vmem [shape: f32[16,128], index: 0, kind: input, shape index: {}]   ;;  %s352_s1 = inlined_call_operand.vmem [shape: bf16[128,128], index: 1, kind: input, shape index: {}]   ;;  %s353_s2 = inlined_call_operand.vmem [shape: f32[1,128], index: 2, kind: input, shape index: {}]   ;;  %s354_s3 = inlined_call_operand.hbm [shape: f32[16,128], index: 3, kind: output, shape index: {}]  }
   0x1   :  { %v299_v0 = vld [vmem:[%s351_s0] sm:$0xff]  ;;  %v304_v1 = vld [vmem:[%s351_s0 + $0x8] sm:$0xff] }
   0x2   :  { %18 = vadd.xlane.f32.xlu0 %v299_v0 }
   0x6   :  { %20 = vadd.xlane.f32.xlu0 %v304_v1 }
   0x7   :  { %8 = vsyncpa [#allocation3], 0  ;;  %v231_v10 = vld [vmem:[%s352_s1] sm:$0xff]   ;;  %v271_v11 = vmov 0.0   ;;  %v232_v12 = vld [vmem:[%s352_s1 + $0x8] sm:$0xff]   ;;  %vm272_vm0 = vmmov 0  }
   0x8   :  { %206 = vmatprep.subr.bf16.mxu0 %v271_v11  ;;  %v233_v13 = vld [vmem:[%s352_s1 + $0x10] sm:$0xff]   ;;  %v234_v14 = vld [vmem:[%s352_s1 + $0x18] sm:$0xff]   ;;  %v235_v15 = vld [vmem:[%s352_s1 + $0x20] sm:$0xff]   ;;  %222 = vmatprep.mubr.msk.bf16.mxu0 %vm272_vm0, %v271_v11  ;;  %s273_s5 = smov [#allocation2]  }
   0x9   :  { %207 = vmatpush3.bf16.msra.mxu0 %v231_v10  ;;  %v236_v16 = vld [vmem:[%s352_s1 + $0x28] sm:$0xff]   ;;  %v237_v17 = vld [vmem:[%s352_s1 + $0x30] sm:$0xff]   ;;  %v238_v18 = vld [vmem:[%s352_s1 + $0x38] sm:$0xff]   ;;  %s177_s6 = sshll.u32 %s273_s5, 4  ;;  %s178_s6 = int_to_ptr.vmem [resolvable:$true] %s177_s6 }
   0xa   :  { %208 = vmatprep.subr.bf16.mxu0 %v271_v11  ;;  %v188_v40 = vld [vmem:[%s353_s2] ss:$0 sm:$0xff]  ;;  %s247_s7 = scalar_lea.vmem %s178_s6, 256  ;;  %p252_p1 = scmp.lt.s32.totalorder %s178_s6, %s178_s6 }
   0xb   :  { %p248_p0 = scmp.ne.s32.totalorder %s178_s6, %s247_s7  ;;  %p253_p2 = scmp.lt.s32.totalorder %s247_s7, %s247_s7 }
   0xd   :  { %209 = vmatpush3.bf16.msra.mxu0 %v232_v12  ;;  %p254_p3 = por %p253_p2, %p252_p1 }
   0xe   :  { %210 = vmatprep.subr.bf16.mxu0 %v271_v11 }
   0xf   :  { %p255_p4 = pnand %p254_p3, %p248_p0 }
  0x11   :  { %211 = vmatpush3.bf16.msra.mxu0 %v233_v13 }
  0x12   :  { %212 = vmatprep.subr.bf16.mxu0 %v271_v11 }
  0x15   :  { %213 = vmatpush3.bf16.msra.mxu0 %v234_v14 }
  0x16   :  { %214 = vmatprep.subr.bf16.mxu0 %v271_v11 }
  0x19   :  { %215 = vmatpush3.bf16.msra.mxu0 %v235_v15 }
  0x1a   :  { %216 = vmatprep.subr.bf16.mxu0 %v271_v11 }
  0x1d   :  { %217 = vmatpush3.bf16.msra.mxu0 %v236_v16 }
  0x1e   :  { %218 = vmatprep.subr.bf16.mxu0 %v271_v11 }
  0x21   :  { %219 = vmatpush3.bf16.msra.mxu0 %v237_v17 }
  0x22   :  { %220 = vmatprep.subr.bf16.mxu0 %v271_v11 }
  0x25   :  { %221 = vmatpush3.bf16.msra.mxu0 %v238_v18 }
  0x8f   :  { %v19_v2 = vpop.xlane.xlu0 %18 }
  0x90   :  { %v23_v3 = vmul.f32 0.0078125, %v19_v2 }
  0x92   :  { %v25_v4 = vsub.f32 %v299_v0, %v23_v3 }
  0x93   :  { %v21_v5 = vpop.xlane.xlu0 %20 }
  0x94   :  { %v24_v6 = vmul.f32 0.0078125, %v21_v5  ;;  %v27_v7 = vmul.f32 %v25_v4, %v25_v4 }
  0x96   :  { %v26_v8 = vsub.f32 %v304_v1, %v24_v6  ;;  %29 = vadd.xlane.f32.xlu1 %v27_v7 }
  0x98   :  { %v28_v9 = vmul.f32 %v26_v8, %v26_v8 }
  0x9a   :  { %31 = vadd.xlane.f32.xlu1 %v28_v9 }
 0x123   :  { %v30_v19 = vpop.xlane.xlu1 %29 }
 0x124   :  { %v33_v20 = vmul.f32 0.007874016, %v30_v19 }
 0x126   :  { %239 = vrsqrt.f32 %v33_v20  ;;  %vm37_vm1 = vcmp.eq.f32.partialorder %v33_v20, inf  ;;  %v40_v25 = vand.u32 2147483648, %v33_v20  ;;  %vm39_vm2 = vcmp.eq.f32.partialorder %v33_v20, 0.0 }
 0x127   :  { %v32_v21 = vpop.xlane.xlu1 %31 }
 0x128   :  { %v34_v22 = vmul.f32 0.007874016, %v32_v21 }
 0x12a   :  { %241 = vrsqrt.f32 %v34_v22  ;;  %vm44_vm3 = vcmp.eq.f32.partialorder %v34_v22, inf  ;;  %v47_v31 = vand.u32 2147483648, %v34_v22  ;;  %vm46_vm4 = vcmp.eq.f32.partialorder %v34_v22, 0.0 }
 0x130   :  { %v240_v23 = vpop.eup %239 }
 0x131   :  { %v36_v24 = vmul.f32 %v240_v23, %v33_v20 }
 0x133   :  { %v38_v26 = vsel %vm37_vm1, %v33_v20, %v36_v24 }
 0x134   :  { %v242_v27 = vpop.eup %241  ;;  %v41_v28 = vsel %vm39_vm2, %v40_v25, %v38_v26 }
 0x135   :  { %v43_v29 = vmul.f32 %v242_v27, %v34_v22  ;;  %v49_v30 = vadd.f32 1e-06, %v41_v28 }
 0x137   :  { %v45_v32 = vsel %vm44_vm3, %v34_v22, %v43_v29  ;;  %243 = vrcp.f32 %v49_v30 }
 0x138   :  { %v48_v33 = vsel %vm46_vm4, %v47_v31, %v45_v32 }
 0x139   :  { %v50_v34 = vadd.f32 1e-06, %v48_v33 }
 0x13b   :  { %245 = vrcp.f32 %v50_v34 }
 0x141   :  { %v244_v35 = vpop.eup %243 }
 0x142   :  { %v53_v37 = vmul.f32 %v244_v35, %v25_v4 }
 0x145   :  { %v246_v36 = vpop.eup %245 }
 0x146   :  { %v54_v38 = vmul.f32 %v246_v36, %v26_v8 }
 0x148   :  { %v55_v39 = vpack.c.bf16 %v54_v38, %v53_v37 }
 0x14a   :  { %223 = vmatmul.mubr.bf16.vlgmr.msra.gmra.mrb[0].mxu0 %v55_v39 }
 0x21d   :  { %v161_v41 = vpop.f32.mrb[0].mxu0 }
 0x21e   :  { %v162_v42 = vadd.f32 %v188_v40, %v161_v41  ;;  %v224_v43 = vpop.f32.mrb[1].mxu0 }
 0x21f   :  { %v164_v44 = vpop.f32.mrb[2].mxu0 }
 0x220   :  { %v168_v45 = vadd.f32 %v162_v42, %v299_v0  ;;  %v165_v46 = vadd.f32 %v188_v40, %v164_v44  ;;  %v225_v47 = vpop.f32.mrb[3].mxu0 }
 0x222   :  { %170 = vst [vmem:[#allocation2] sm:$0xff] %v168_v45  ;;  %v169_v48 = vadd.f32 %v165_v46, %v304_v1 }
 0x224   :  { %171 = vst [vmem:[#allocation2 + $0x8] sm:$0xff] %v169_v48 }
 0x225   :  { %258 = shalt.err (!%p255_p4)
}
 0x226   :  { %s259_s9 = scalar_lea.hbm %s354_s3, 256 }
 0x227   :  { %p260_p5 = scmp.ne.s32.totalorder %s354_s3, %s259_s9  ;;  %p263_p6 = scmp.lt.u32.totalorder %s259_s9, %s354_s3 }
 0x229   :  { %p265_p7 = pnand %p263_p6, %p260_p5 }
 0x22b   :  { %268 = shalt.err (!%p265_p7)
}
 0x22c   :  { %s274_s14 = smov 128   ;;  %s275_s15 = smov 8  }
 0x22d   :  { %183 = dma.vmem_to_hbm [thread:$0]  %s178_s6, 256, %s354_s3, [#allocation3], %s274_s14, %s274_s14, %s275_s15  }
 0x22e   :  { %269 = dma.done.wait [#allocation3], 256  }
 0x22f   :  { %270 = vsyncadd [#allocation3], 4294967040 }
 0x230   :  { %187 = vsyncpa [#allocation3], 1 }

</bundles_post_ra>
